<compile_context>
chip_gen: v6e
topology: v6e:2x2x1
jax: 0.10.0
libtpu: 0.0.40
codegen_flags: <defaults>
</compile_context>

<pallas_src>
import jax
import jax.numpy as jnp
import numpy as np
from jax.experimental import pallas as pl
from jax.experimental.pallas import tpu as pltpu


# ----------------------------------------------------------------------------
# Kernel
# ----------------------------------------------------------------------------
def _splat_flow_kernel(x_ref, infl_ref, infl_t_ref,
                       w_enc_t_ref, b_enc_ref,
                       sel_ref, w_bd_ref, b_fused_ref,
                       w_gate_t_ref, b_gate_ref,
                       out_ref):
    Bt, S, D = x_ref.shape          # batch rows handled by this grid step
    K = infl_ref.shape[2]

    # ---- gather: per-row [K, S] @ [S, D] matmuls stacked into one slab -------
    # infl_t arrives pre-transposed ([Bt, K, S]) so the contraction is on the
    # last dim of the LHS — no in-kernel XLU transpose.
    gathered_rows = []
    tot_rows = []
    for b in range(Bt):
        infl_t_b = infl_t_ref[b]                                   # [K, S]
        gathered_rows.append(
            jnp.dot(infl_t_b, x_ref[b],
                    preferred_element_type=jnp.float32))           # [K, D]
        tot_rows.append(jnp.sum(infl_t_b, axis=1, keepdims=True))  # [K, 1]
    gathered = jnp.concatenate(gathered_rows, axis=0)              # [Bt*K, D]
    # Normalization deferred past the encoder matmul (row scaling commutes
    # with the matmul); applied strictly before the bias add and ReLU.
    inv = 1.0 / jnp.maximum(jnp.concatenate(tot_rows, axis=0), 1e-8)  # [Bt*K,1]

    # ---- encoder: ONE matmul for the whole block -----------------------------
    enc = jnp.dot(gathered, w_enc_t_ref[...],
                  preferred_element_type=jnp.float32)              # [Bt*K, Bd]
    enc = jnp.maximum(enc * inv + b_enc_ref[...], 0.0)             # ReLU; dropout=identity

    # ---- per-splat transform fused with decoder: ONE block-diagonal matmul ---
    #   dec_{b,k} = enc_{b,k} @ (w_dec @ w_t[k])^T + (b_t[k] @ w_dec^T + b_dec)
    # realized by expanding each enc row into its splat's column block (the
    # sel mask repeats every K rows, so it broadcasts unchanged across b) and
    # one [Bt*K, K*Bd] @ [K*Bd, D] MXU matmul.
    enc_exp = jnp.concatenate([enc] * K, axis=1) * sel_ref[...]    # [Bt*K, K*Bd]
    dec = (jnp.dot(enc_exp, w_bd_ref[...],
                   preferred_element_type=jnp.float32)
           + b_fused_ref[...])                                     # [Bt*K, D]

    # ---- redistribute per row, stacked back into one [Bt*S, D] slab ----------
    flow_rows = []
    for b in range(Bt):
        dec_b = dec[b * K:(b + 1) * K, :]                          # [K, D]
        flow_rows.append(
            jnp.dot(infl_ref[b], dec_b,
                    preferred_element_type=jnp.float32))           # [S, D]
    flow = jnp.concatenate(flow_rows, axis=0)                      # [Bt*S, D]

    # ---- flow gate: one [Bt*S, D] @ [D, D] matmul (layout-preserving reshape)
    x_flat = x_ref[...].reshape(Bt * S, D)
    gate = jax.nn.sigmoid(
        jnp.dot(x_flat, w_gate_t_ref[...],
                preferred_element_type=jnp.float32) + b_gate_ref[...])

    # ---- single fused block store --------------------------------------------
    out_ref[...] = (flow * gate).reshape(Bt, S, D).astype(out_ref.dtype)


# ----------------------------------------------------------------------------
# Grid-step sizing
# ----------------------------------------------------------------------------
# 8 rows/step amortizes the ~0.35us per-step pipeline overhead while keeping
# the static unroll and vreg pressure bounded (with D=32 every [S, D] tile is
# lane-sparse, so larger Bt starts spilling well before VMEM is an issue).
_MAX_ROWS_PER_STEP = 8


def _is_two_core_chip():
    try:
        return "v7" in jax.devices()[0].device_kind.lower()
    except Exception:
        return False


def _largest_divisor_at_most(n, cap):
    best = 1
    for d in range(1, min(n, cap) + 1):
        if n % d == 0:
            best = d
    return best


def _batch_block(batch_size):
    bt = _largest_divisor_at_most(batch_size, _MAX_ROWS_PER_STEP)
    # v7x (2 TensorCores/chip): only split the batch across both cores when
    # each core gets >= 8 rows of work; otherwise a single step on one core is
    # cheaper than paying the step overhead twice.  (Mis-detection only
    # affects perf, never results.)
    if _is_two_core_chip() and batch_size // bt == 1 and batch_size >= 2 * _MAX_ROWS_PER_STEP:
        bt = _largest_divisor_at_most(batch_size, batch_size // 2)
    return bt


# ----------------------------------------------------------------------------
# Wrapper
# ----------------------------------------------------------------------------
def splat_information_flow(token_embeddings, splat_influences, params):
    """token_embeddings: [B, S, D] f32, splat_influences: [B, S, K] f32."""
    B, S, D = token_embeddings.shape
    K = splat_influences.shape[-1]
    Bd = params['w_enc'].shape[0]
    assert S % 8 == 0, "seq_len must be a multiple of 8 (sublane-aligned layout)"

    Bt = _batch_block(B)
    assert B % Bt == 0
    G = B // Bt

    f32 = jnp.float32
    hp = jax.lax.Precision.HIGHEST   # host-side weight fusion at full f32

    x = token_embeddings.astype(f32)
    infl = splat_influences.astype(f32)
    infl_t = jnp.swapaxes(infl, 1, 2)                                     # [B, K, S]

    # ---- host-side layout plumbing / weight fusion (one-time XLA ops) --------
    w_enc_t = params['w_enc'].T.astype(f32)                               # [D, Bd]
    b_enc = params['b_enc'].astype(f32)                                   # [1, Bd]
    # Fused per-splat transform + decoder, laid out block-diagonally:
    #   W_bd[k*Bd + e, d] = sum_f w_t[k, f, e] * w_dec[d, f]
    w_bd = jnp.einsum('kce,dc->ked', params['w_t'], params['w_dec'],
                      precision=hp).reshape(K * Bd, D).astype(f32)        # [K*Bd, D]
    b_fused = (jnp.dot(params['b_t'], params['w_dec'].T, precision=hp)
               + params['b_dec']).astype(f32)                             # [K, D]
    # selector mask: row k keeps only its own Bd-wide column block; tiled Bt
    # times so it covers the whole [Bt*K, K*Bd] slab.
    sel = (jnp.arange(K * Bd)[None, :] // Bd
           == jnp.arange(K)[:, None]).astype(f32)                         # [K, K*Bd]
    sel_tiled = jnp.tile(sel, (Bt, 1))                                    # [Bt*K, K*Bd]
    b_fused_tiled = jnp.tile(b_fused, (Bt, 1))                            # [Bt*K, D]
    w_gate_t = params['w_gate'].T.astype(f32)                             # [D, D]
    b_gate = params['b_gate'].astype(f32)                                 # [1, D]

    # Weights: full-array blocks with a constant index_map -> VMEM-resident
    # across all grid steps (no per-step weight DMA).
    full = lambda a: pl.BlockSpec(a.shape, lambda g: (0,) * a.ndim)

    return pl.pallas_call(
        _splat_flow_kernel,
        out_shape=jax.ShapeDtypeStruct((B, S, D), jnp.float32),
        grid_spec=pltpu.PrefetchScalarGridSpec(
            num_scalar_prefetch=0,
            grid=(G,),
            in_specs=[
                pl.BlockSpec((Bt, S, D), lambda g: (g, 0, 0)),   # token_embeddings
                pl.BlockSpec((Bt, S, K), lambda g: (g, 0, 0)),   # splat_influences
                pl.BlockSpec((Bt, K, S), lambda g: (g, 0, 0)),   # influences (pre-transposed)
                full(w_enc_t),      # encoder weight (pre-transposed)
                full(b_enc),        # encoder bias
                full(sel_tiled),    # block-diagonal selector mask (tiled over Bt)
                full(w_bd),         # fused transform+decoder weight
                full(b_fused_tiled),# fused transform+decoder bias (tiled over Bt)
                full(w_gate_t),     # gate weight (pre-transposed)
                full(b_gate),       # gate bias
            ],
            out_specs=pl.BlockSpec((Bt, S, D), lambda g: (g, 0, 0)),
        ),
        compiler_params=pltpu.CompilerParams(
            dimension_semantics=("parallel",)),
    )(x, infl, infl_t, w_enc_t, b_enc, sel_tiled, w_bd, b_fused_tiled,
      w_gate_t, b_gate)


# ----------------------------------------------------------------------------
# Parameters / reference
# ----------------------------------------------------------------------------
def init_params(key, model_dim, num_splats, information_bottleneck=True):
    """Deterministic synthetic parameters matching the PyTorch module's shapes."""
    bd = model_dim // 2 if information_bottleneck else model_dim
    ks = jax.random.split(key, 10)
    s = 0.1
    return {
        'w_enc':  s * jax.random.normal(ks[0], (bd, model_dim), jnp.float32),
        'b_enc':  s * jax.random.normal(ks[1], (1, bd), jnp.float32),
        'w_t':    s * jax.random.normal(ks[2], (num_splats, bd, bd), jnp.float32),
        'b_t':    s * jax.random.normal(ks[3], (num_splats, bd), jnp.float32),
        'w_dec':  s * jax.random.normal(ks[4], (model_dim, bd), jnp.float32),
        'b_dec':  s * jax.random.normal(ks[5], (1, model_dim), jnp.float32),
        'w_gate': s * jax.random.normal(ks[6], (model_dim, model_dim), jnp.float32),
        'b_gate': s * jax.random.normal(ks[7], (1, model_dim), jnp.float32),
    }


def reference_forward(x, infl, p):
    """Pure-JAX reference mirroring the PyTorch forward (eval mode), UNFUSED —
    validates the fused/deferred kernel math against the original formulation.
    Runs at HIGHEST matmul precision so it is a true-f32 baseline."""
    hp = jax.lax.Precision.HIGHEST
    infl_t = jnp.swapaxes(infl, 1, 2)                               # [B, K, S]
    gathered = jnp.einsum('bks,bsd->bkd', infl_t, x, precision=hp)
    total = jnp.clip(jnp.sum(infl_t, axis=2, keepdims=True), 1e-8, None)
    gathered = gathered / total
    enc = jax.nn.relu(jnp.einsum('bkd,ed->bke', gathered, p['w_enc'],
                                 precision=hp) + p['b_enc'][0])
    trans = jnp.einsum('bke,kfe->bkf', enc, p['w_t'], precision=hp) + p['b_t'][None]
    dec = jnp.einsum('bkf,df->bkd', trans, p['w_dec'], precision=hp) + p['b_dec'][0]
    flow = jnp.einsum('bsk,bkd->bsd', infl, dec, precision=hp)
    gate = jax.nn.sigmoid(jnp.einsum('bsd,ed->bse', x, p['w_gate'],
                                     precision=hp) + p['b_gate'][0])
    return flow * gate


if __name__ == "__main__":
    B, S, D, K = 2, 16, 32, 4   # batch, seq, model_dim, num_splats

    key = jax.random.PRNGKey(0)
    k_x, k_i, k_p = jax.random.split(key, 3)

    token_embeddings = jax.random.normal(k_x, (B, S, D), jnp.float32)
    # non-negative influences, like softmax/attention weights would be
    splat_influences = jax.nn.softmax(
        jax.random.normal(k_i, (B, S, K), jnp.float32), axis=-1)

    params = init_params(k_p, D, K, information_bottleneck=True)

    out = splat_information_flow(token_embeddings, splat_influences, params)
    out = jax.block_until_ready(out)

    ref = reference_forward(token_embeddings, splat_influences, params)
    ref = jax.block_until_ready(ref)
    # Tolerance allows for the TPU's default f32-matmul bf16-pass decomposition
    # interacting with the kernel's fused/deferred restructuring; real bugs
    # produce O(0.1)-scale errors, so this remains a meaningful check.
    np.testing.assert_allclose(np.asarray(out), np.asarray(ref),
                               rtol=2e-3, atol=2e-3)

    print("KERNEL_OK")
</pallas_src>

<mosaic_0001>
module attributes {stable_mosaic.version = 11 : i64} {
  func.func @_splat_flow_kernel(%arg0: i32, %arg1: memref<2x16x32xf32, #tpu.memory_space<vmem>>, %arg2: memref<2x16x4xf32, #tpu.memory_space<vmem>>, %arg3: memref<2x4x16xf32, #tpu.memory_space<vmem>>, %arg4: memref<32x16xf32, #tpu.memory_space<vmem>>, %arg5: memref<1x16xf32, #tpu.memory_space<vmem>>, %arg6: memref<8x64xf32, #tpu.memory_space<vmem>>, %arg7: memref<64x32xf32, #tpu.memory_space<vmem>>, %arg8: memref<8x32xf32, #tpu.memory_space<vmem>>, %arg9: memref<32x32xf32, #tpu.memory_space<vmem>>, %arg10: memref<1x32xf32, #tpu.memory_space<vmem>>, %arg11: memref<2x16x32xf32, #tpu.memory_space<vmem>>) attributes {dimension_semantics = [#tpu.dimension_semantics<parallel>], iteration_bounds = array<i64: 1>, scalar_prefetch = 0 : i64, scratch_operands = 0 : i64, tpu.core_type = #tpu.core_type<tc>, window_params = [{transform_indices = @transform_0, window_bounds = array<i64: 2, 16, 32>}, {transform_indices = @transform_1, window_bounds = array<i64: 2, 16, 4>}, {transform_indices = @transform_2, window_bounds = array<i64: 2, 4, 16>}, {pipeline_mode = #tpu.pipeline_mode<synchronous>, transform_indices = @transform_3, window_bounds = array<i64: 32, 16>}, {pipeline_mode = #tpu.pipeline_mode<synchronous>, transform_indices = @transform_4, window_bounds = array<i64: 1, 16>}, {pipeline_mode = #tpu.pipeline_mode<synchronous>, transform_indices = @transform_5, window_bounds = array<i64: 8, 64>}, {pipeline_mode = #tpu.pipeline_mode<synchronous>, transform_indices = @transform_6, window_bounds = array<i64: 64, 32>}, {pipeline_mode = #tpu.pipeline_mode<synchronous>, transform_indices = @transform_7, window_bounds = array<i64: 8, 32>}, {pipeline_mode = #tpu.pipeline_mode<synchronous>, transform_indices = @transform_8, window_bounds = array<i64: 32, 32>}, {pipeline_mode = #tpu.pipeline_mode<synchronous>, transform_indices = @transform_9, window_bounds = array<i64: 1, 32>}, {transform_indices = @transform_10, window_bounds = array<i64: 2, 16, 32>}]} {
    %c0 = arith.constant 0 : index
    %c0_0 = arith.constant 0 : index
    %c0_1 = arith.constant 0 : index
    %0 = vector.load %arg3[%c0, %c0_0, %c0_1] : memref<2x4x16xf32, #tpu.memory_space<vmem>>, vector<1x4x16xf32>
    %1 = vector.shape_cast %0 : vector<1x4x16xf32> to vector<4x16xf32>
    %c0_2 = arith.constant 0 : index
    %c0_3 = arith.constant 0 : index
    %c0_4 = arith.constant 0 : index
    %2 = vector.load %arg1[%c0_2, %c0_3, %c0_4] : memref<2x16x32xf32, #tpu.memory_space<vmem>>, vector<1x16x32xf32>
    %3 = vector.shape_cast %2 : vector<1x16x32xf32> to vector<16x32xf32>
    %cst = arith.constant dense<0.000000e+00> : vector<4x32xf32>
    %4 = tpu.matmul %1, %3, %cst {dimension_numbers = #tpu.dot_dimension_numbers<[1], [0], [0], [1], [0, 0, 1, 1], [], []>} : vector<4x16xf32>, vector<16x32xf32>, vector<4x32xf32> -> vector<4x32xf32>
    %cst_5 = arith.constant dense<0.000000e+00> : vector<4xf32>
    %5 = vector.multi_reduction <add>, %1, %cst_5 [1] : vector<4x16xf32> to vector<4xf32>
    %6 = vector.shape_cast %5 : vector<4xf32> to vector<4x1xf32>
    %c1 = arith.constant 1 : index
    %c0_6 = arith.constant 0 : index
    %c0_7 = arith.constant 0 : index
    %7 = vector.load %arg3[%c1, %c0_6, %c0_7] : memref<2x4x16xf32, #tpu.memory_space<vmem>>, vector<1x4x16xf32>
    %8 = vector.shape_cast %7 : vector<1x4x16xf32> to vector<4x16xf32>
    %c1_8 = arith.constant 1 : index
    %c0_9 = arith.constant 0 : index
    %c0_10 = arith.constant 0 : index
    %9 = vector.load %arg1[%c1_8, %c0_9, %c0_10] : memref<2x16x32xf32, #tpu.memory_space<vmem>>, vector<1x16x32xf32>
    %10 = vector.shape_cast %9 : vector<1x16x32xf32> to vector<16x32xf32>
    %cst_11 = arith.constant dense<0.000000e+00> : vector<4x32xf32>
    %11 = tpu.matmul %8, %10, %cst_11 {dimension_numbers = #tpu.dot_dimension_numbers<[1], [0], [0], [1], [0, 0, 1, 1], [], []>} : vector<4x16xf32>, vector<16x32xf32>, vector<4x32xf32> -> vector<4x32xf32>
    %cst_12 = arith.constant dense<0.000000e+00> : vector<4xf32>
    %12 = vector.multi_reduction <add>, %8, %cst_12 [1] : vector<4x16xf32> to vector<4xf32>
    %13 = vector.shape_cast %12 : vector<4xf32> to vector<4x1xf32>
    %14 = tpu.concatenate %4, %11 in 0 : vector<4x32xf32>, vector<4x32xf32> -> vector<8x32xf32>
    %15 = tpu.concatenate %6, %13 in 0 : vector<4x1xf32>, vector<4x1xf32> -> vector<8x1xf32>
    %cst_13 = arith.constant 9.99999993E-9 : f32
    %16 = vector.broadcast %cst_13 : f32 to vector<8x1xf32>
    %17 = arith.maximumf %15, %16 : vector<8x1xf32>
    %cst_14 = arith.constant 1.000000e+00 : f32
    %18 = vector.broadcast %cst_14 : f32 to vector<8x1xf32>
    %19 = arith.divf %18, %17 : vector<8x1xf32>
    %c0_15 = arith.constant 0 : index
    %c0_16 = arith.constant 0 : index
    %20 = vector.load %arg4[%c0_15, %c0_16] : memref<32x16xf32, #tpu.memory_space<vmem>>, vector<32x16xf32>
    %cst_17 = arith.constant dense<0.000000e+00> : vector<8x16xf32>
    %21 = tpu.matmul %14, %20, %cst_17 {dimension_numbers = #tpu.dot_dimension_numbers<[1], [0], [0], [1], [0, 0, 1, 1], [], []>} : vector<8x32xf32>, vector<32x16xf32>, vector<8x16xf32> -> vector<8x16xf32>
    %22 = vector.broadcast %19 : vector<8x1xf32> to vector<8x16xf32>
    %23 = arith.mulf %21, %22 : vector<8x16xf32>
    %c0_18 = arith.constant 0 : index
    %c0_19 = arith.constant 0 : index
    %24 = vector.load %arg5[%c0_18, %c0_19] : memref<1x16xf32, #tpu.memory_space<vmem>>, vector<1x16xf32>
    %25 = vector.broadcast %24 : vector<1x16xf32> to vector<8x16xf32>
    %26 = arith.addf %23, %25 : vector<8x16xf32>
    %cst_20 = arith.constant 0.000000e+00 : f32
    %27 = vector.broadcast %cst_20 : f32 to vector<8x16xf32>
    %28 = arith.maximumf %26, %27 : vector<8x16xf32>
    %29 = tpu.concatenate %28, %28, %28, %28 in 1 : vector<8x16xf32>, vector<8x16xf32>, vector<8x16xf32>, vector<8x16xf32> -> vector<8x64xf32>
    %c0_21 = arith.constant 0 : index
    %c0_22 = arith.constant 0 : index
    %30 = vector.load %arg6[%c0_21, %c0_22] : memref<8x64xf32, #tpu.memory_space<vmem>>, vector<8x64xf32>
    %31 = arith.mulf %29, %30 : vector<8x64xf32>
    %c0_23 = arith.constant 0 : index
    %c0_24 = arith.constant 0 : index
    %32 = vector.load %arg7[%c0_23, %c0_24] : memref<64x32xf32, #tpu.memory_space<vmem>>, vector<64x32xf32>
    %cst_25 = arith.constant dense<0.000000e+00> : vector<8x32xf32>
    %33 = tpu.matmul %31, %32, %cst_25 {dimension_numbers = #tpu.dot_dimension_numbers<[1], [0], [0], [1], [0, 0, 1, 1], [], []>} : vector<8x64xf32>, vector<64x32xf32>, vector<8x32xf32> -> vector<8x32xf32>
    %c0_26 = arith.constant 0 : index
    %c0_27 = arith.constant 0 : index
    %34 = vector.load %arg8[%c0_26, %c0_27] : memref<8x32xf32, #tpu.memory_space<vmem>>, vector<8x32xf32>
    %35 = arith.addf %33, %34 : vector<8x32xf32>
    %36 = vector.extract_strided_slice %35 {offsets = [0, 0], sizes = [4, 32], strides = [1, 1]} : vector<8x32xf32> to vector<4x32xf32>
    %c0_28 = arith.constant 0 : index
    %c0_29 = arith.constant 0 : index
    %c0_30 = arith.constant 0 : index
    %37 = vector.load %arg2[%c0_28, %c0_29, %c0_30] : memref<2x16x4xf32, #tpu.memory_space<vmem>>, vector<1x16x4xf32>
    %38 = vector.shape_cast %37 : vector<1x16x4xf32> to vector<16x4xf32>
    %cst_31 = arith.constant dense<0.000000e+00> : vector<16x32xf32>
    %39 = tpu.matmul %38, %36, %cst_31 {dimension_numbers = #tpu.dot_dimension_numbers<[1], [0], [0], [1], [0, 0, 1, 1], [], []>} : vector<16x4xf32>, vector<4x32xf32>, vector<16x32xf32> -> vector<16x32xf32>
    %40 = vector.extract_strided_slice %35 {offsets = [4, 0], sizes = [4, 32], strides = [1, 1]} : vector<8x32xf32> to vector<4x32xf32>
    %c1_32 = arith.constant 1 : index
    %c0_33 = arith.constant 0 : index
    %c0_34 = arith.constant 0 : index
    %41 = vector.load %arg2[%c1_32, %c0_33, %c0_34] : memref<2x16x4xf32, #tpu.memory_space<vmem>>, vector<1x16x4xf32>
    %42 = vector.shape_cast %41 : vector<1x16x4xf32> to vector<16x4xf32>
    %cst_35 = arith.constant dense<0.000000e+00> : vector<16x32xf32>
    %43 = tpu.matmul %42, %40, %cst_35 {dimension_numbers = #tpu.dot_dimension_numbers<[1], [0], [0], [1], [0, 0, 1, 1], [], []>} : vector<16x4xf32>, vector<4x32xf32>, vector<16x32xf32> -> vector<16x32xf32>
    %44 = tpu.concatenate %39, %43 in 0 : vector<16x32xf32>, vector<16x32xf32> -> vector<32x32xf32>
    %c0_36 = arith.constant 0 : index
    %c0_37 = arith.constant 0 : index
    %c0_38 = arith.constant 0 : index
    %45 = vector.load %arg1[%c0_36, %c0_37, %c0_38] : memref<2x16x32xf32, #tpu.memory_space<vmem>>, vector<2x16x32xf32>
    %46 = vector.shape_cast %45 : vector<2x16x32xf32> to vector<32x32xf32>
    %c0_39 = arith.constant 0 : index
    %c0_40 = arith.constant 0 : index
    %47 = vector.load %arg9[%c0_39, %c0_40] : memref<32x32xf32, #tpu.memory_space<vmem>>, vector<32x32xf32>
    %cst_41 = arith.constant dense<0.000000e+00> : vector<32x32xf32>
    %48 = tpu.matmul %46, %47, %cst_41 {dimension_numbers = #tpu.dot_dimension_numbers<[1], [0], [0], [1], [0, 0, 1, 1], [], []>} : vector<32x32xf32>, vector<32x32xf32>, vector<32x32xf32> -> vector<32x32xf32>
    %c0_42 = arith.constant 0 : index
    %c0_43 = arith.constant 0 : index
    %49 = vector.load %arg10[%c0_42, %c0_43] : memref<1x32xf32, #tpu.memory_space<vmem>>, vector<1x32xf32>
    %50 = vector.broadcast %49 : vector<1x32xf32> to vector<32x32xf32>
    %51 = arith.addf %48, %50 : vector<32x32xf32>
    %52 = arith.negf %51 : vector<32x32xf32>
    %53 = math.exp %52 : vector<32x32xf32>
    %cst_44 = arith.constant 1.000000e+00 : f32
    %54 = vector.broadcast %cst_44 : f32 to vector<32x32xf32>
    %55 = arith.addf %54, %53 : vector<32x32xf32>
    %56 = arith.divf %54, %55 : vector<32x32xf32>
    %57 = arith.mulf %44, %56 : vector<32x32xf32>
    %58 = vector.shape_cast %57 : vector<32x32xf32> to vector<2x16x32xf32>
    %c0_45 = arith.constant 0 : index
    %c0_46 = arith.constant 0 : index
    %c0_47 = arith.constant 0 : index
    %59 = vector.load %arg11[%c0_45, %c0_46, %c0_47] : memref<2x16x32xf32, #tpu.memory_space<vmem>>, vector<2x16x32xf32>
    tpu.vector_store %arg11[%c0_45, %c0_46, %c0_47], %58 {strides = array<i32>} : memref<2x16x32xf32, #tpu.memory_space<vmem>>, vector<2x16x32xf32>,
    return
  }
  func.func @transform_0(%arg0: i32) -> (i32, i32, i32) {
    %c0_i32 = arith.constant 0 : i32
    %c0_i32_0 = arith.constant 0 : i32
    %c0_i32_1 = arith.constant 0 : i32
    return %arg0, %c0_i32, %c0_i32_0 : i32, i32, i32
  }
  func.func @transform_1(%arg0: i32) -> (i32, i32, i32) {
    %c0_i32 = arith.constant 0 : i32
    %c0_i32_0 = arith.constant 0 : i32
    %c0_i32_1 = arith.constant 0 : i32
    return %arg0, %c0_i32, %c0_i32_0 : i32, i32, i32
  }
  func.func @transform_2(%arg0: i32) -> (i32, i32, i32) {
    %c0_i32 = arith.constant 0 : i32
    %c0_i32_0 = arith.constant 0 : i32
    %c0_i32_1 = arith.constant 0 : i32
    return %arg0, %c0_i32, %c0_i32_0 : i32, i32, i32
  }
  func.func @transform_3(%arg0: i32) -> (i32, i32) {
    %c0_i32 = arith.constant 0 : i32
    %c0_i32_0 = arith.constant 0 : i32
    %c0_i32_1 = arith.constant 0 : i32
    return %c0_i32, %c0_i32_0 : i32, i32
  }
  func.func @transform_4(%arg0: i32) -> (i32, i32) {
    %c0_i32 = arith.constant 0 : i32
    %c0_i32_0 = arith.constant 0 : i32
    %c0_i32_1 = arith.constant 0 : i32
    return %c0_i32, %c0_i32_0 : i32, i32
  }
  func.func @transform_5(%arg0: i32) -> (i32, i32) {
    %c0_i32 = arith.constant 0 : i32
    %c0_i32_0 = arith.constant 0 : i32
    %c0_i32_1 = arith.constant 0 : i32
    return %c0_i32, %c0_i32_0 : i32, i32
  }
  func.func @transform_6(%arg0: i32) -> (i32, i32) {
    %c0_i32 = arith.constant 0 : i32
    %c0_i32_0 = arith.constant 0 : i32
    %c0_i32_1 = arith.constant 0 : i32
    return %c0_i32, %c0_i32_0 : i32, i32
  }
  func.func @transform_7(%arg0: i32) -> (i32, i32) {
    %c0_i32 = arith.constant 0 : i32
    %c0_i32_0 = arith.constant 0 : i32
    %c0_i32_1 = arith.constant 0 : i32
    return %c0_i32, %c0_i32_0 : i32, i32
  }
  func.func @transform_8(%arg0: i32) -> (i32, i32) {
    %c0_i32 = arith.constant 0 : i32
    %c0_i32_0 = arith.constant 0 : i32
    %c0_i32_1 = arith.constant 0 : i32
    return %c0_i32, %c0_i32_0 : i32, i32
  }
  func.func @transform_9(%arg0: i32) -> (i32, i32) {
    %c0_i32 = arith.constant 0 : i32
    %c0_i32_0 = arith.constant 0 : i32
    %c0_i32_1 = arith.constant 0 : i32
    return %c0_i32, %c0_i32_0 : i32, i32
  }
  func.func @transform_10(%arg0: i32) -> (i32, i32, i32) {
    %c0_i32 = arith.constant 0 : i32
    %c0_i32_0 = arith.constant 0 : i32
    %c0_i32_1 = arith.constant 0 : i32
    return %arg0, %c0_i32, %c0_i32_0 : i32, i32, i32
  }
}

</mosaic_0001>

<bundles_post_ra>
// kernel: tpu_custom_call.1
= control target key start
LH: loop header
LB: loop body
LE: loop exit
PB: predicated region body
PF: predicated region fallthrough
CT: control target
= control target key end

     0   :  { %v914_v1 = vmov 0.0   ;;  %vm915_vm0 = vmmov 0   ;;  %vm113_vm1 = vcmask 125952   ;;  %vm39_vm2 = vcmask 130048   ;;  %s1134_s0 = inlined_call_operand.vmem [shape: f32[2,16,32], index: 0, kind: input, shape index: {}]   ;;  %s1135_s1 = inlined_call_operand.vmem [shape: f32[2,16,4], index: 1, kind: input, shape index: {}]   ;;  %s1136_s2 = inlined_call_operand.vmem [shape: f32[2,4,16], index: 2, kind: input, shape index: {}]   ;;  %s1137_s3 = inlined_call_operand.vmem [shape: f32[32,16], index: 3, kind: input, shape index: {}]   ;;  %s1138_s4 = inlined_call_operand.vmem [shape: f32[1,16], index: 4, kind: input, shape index: {}]   ;;  %s1139_s5 = inlined_call_operand.vmem [shape: f32[8,64], index: 5, kind: input, shape index: {}]   ;;  %s1140_s6 = inlined_call_operand.vmem [shape: f32[64,32], index: 6, kind: input, shape index: {}]   ;;  %s1141_s7 = inlined_call_operand.vmem [shape: f32[8,32], index: 7, kind: input, shape index: {}]   ;;  %s1142_s8 = inlined_call_operand.vmem [shape: f32[32,32], index: 8, kind: input, shape index: {}]   ;;  %s1143_s9 = inlined_call_operand.vmem [shape: f32[1,32], index: 9, kind: input, shape index: {}]   ;;  %s1144_s10 = inlined_call_operand.hbm [shape: f32[2,16,32], index: 10, kind: output, shape index: {}]  }
   0x1   :  { %v981_v0 = vld [vmem:[%s1134_s0 + $0x8] sm:$0xff]  ;;  %795 = vmatprep.subr.mxu1 %v914_v1  ;;  %v987_v2 = vld [vmem:[%s1134_s0] sm:$0xff]  ;;  %799 = vmatprep.mubr.msk.f32.mxu1 %vm915_vm0, %v914_v1 }
   0x2   :  { %v737_v3 = vld [vmem:[%s1136_s2 + $0x4] sm:$0xf]  ;;  %796 = vmatpush3.msra.mxu1 %v981_v0  ;;  %v36_v4 = vld [vmem:[%s1136_s2] sm:$0xf]  ;;  %809 = vmatprep.subr.mxu0 %v914_v1 }
   0x3   :  { %v195_v5 = vsel %vm113_vm1, %v737_v3, 0.0 }
   0x4   :  { %15 = vsyncpa [#allocation3], 0  ;;  %797 = vmatprep.subr.mxu1 %v914_v1  ;;  %v1003_v6 = vld [vmem:[%s1134_s0 + $0x18] sm:$0xff]  ;;  %196 = vadd.xlane.f32.xlu0 %v195_v5  ;;  %v114_v7 = vsel %vm113_vm1, %v36_v4, 0.0  ;;  %v1013_v8 = vld [vmem:[%s1134_s0 + $0x10] sm:$0xff]  ;;  %v916_v13 = vmov 0  }
   0x5   :  { %798 = vmatpush3.msra.mxu1 %v987_v2  ;;  %817 = vmatprep.mubr.msk.f32.mxu0 %vm915_vm0, %v914_v1  ;;  %v213_v9 = vld [vmem:[%s1137_s3 + $0x18] sm:$0xff]  ;;  %v212_v10 = vld [vmem:[%s1137_s3 + $0x10] sm:$0xff]  ;;  %v211_v11 = vld [vmem:[%s1137_s3 + $0x8] sm:$0xff]  ;;  %vm201_vm3 = vcmask 1043456   ;;  %vm214_vm4 = vcmask 261120   ;;  %s917_s26 = smov 32  }
   0x6   :  { %800 = vmatmul.mubr.msk.f32.vlgmr.msra.gmra.mxu1 %vm39_vm2, %v36_v4  ;;  %802 = vmatprep.subr.mxu1 %v914_v1  ;;  %v210_v12 = vld [vmem:[%s1137_s3] sm:$0xff]  ;;  %v326_v26 = vld [vmem:[%s1140_s6 + $0x38] sm:$0xff]  ;;  %v325_v27 = vld [vmem:[%s1140_s6 + $0x30] sm:$0xff]  ;;  %s918_s27 = smov 16   ;;  %s919_s28 = smov 48   ;;  %vm315_vm5 = vcmask 392192  }
   0x7   :  { %803 = vmatpush3.msra.mxu1 %v1003_v6  ;;  %806 = vmatprep.mubr.msk.f32.mxu1 %vm915_vm0, %v914_v1  ;;  %v324_v28 = vld [vmem:[%s1140_s6 + $0x28] sm:$0xff]  ;;  %v323_v29 = vld [vmem:[%s1140_s6 + $0x20] sm:$0xff]  ;;  %v322_v30 = vld [vmem:[%s1140_s6 + $0x18] sm:$0xff]  ;;  %vm328_vm6 = vcmask 523264   ;;  %vm404_vm7 = vcmask 31744  }
   0x8   :  { %804 = vmatprep.subr.mxu1 %v914_v1  ;;  %115 = vadd.xlane.f32.xlu0 %v114_v7  ;;  %v321_v31 = vld [vmem:[%s1140_s6 + $0x10] sm:$0xff]  ;;  %v320_v32 = vld [vmem:[%s1140_s6 + $0x8] sm:$0xff]  ;;  %v319_v33 = vld [vmem:[%s1140_s6] sm:$0xff] }
   0x9   :  { %805 = vmatpush3.msra.mxu1 %v1013_v8  ;;  %810 = vmatpush3.msra.mxu0 %v213_v9  ;;  %v742_v36 = vld [vmem:[%s1138_s4] ss:$0 sm:$0xff]  ;;  %v403_v54 = vld [vmem:[%s1135_s1 + $0x8] sm:$0xff]  ;;  %v747_v56 = vld [vmem:[%s1135_s1 + $0x10] sm:$0xff] }
   0xa   :  { %807 = vmatmul.mubr.msk.f32.vlgmr.msra.gmra.mxu1 %vm39_vm2, %v737_v3  ;;  %820 = vmatprep.subr.mxu1 %v914_v1  ;;  %v317_v44 = vld [vmem:[%s1139_s5] sm:$0xff]  ;;  %v583_v57 = vld [vmem:[%s1142_s8 + $0x18] sm:$0xff]  ;;  %v582_v59 = vld [vmem:[%s1142_s8 + $0x10] sm:$0xff] }
   0xb   :  { %836 = vmatprep.mubr.msk.f32.mxu1 %vm915_vm0, %v914_v1  ;;  %811 = vmatprep.subr.mxu0 %v914_v1  ;;  %v402_v49 = vld [vmem:[%s1135_s1] sm:$0xff]  ;;  %v748_v58 = vld [vmem:[%s1135_s1 + $0x18] sm:$0xff]  ;;  %v581_v60 = vld [vmem:[%s1142_s8 + $0x8] sm:$0xff] }
   0xc   :  { %812 = vmatpush3.msra.mxu0 %v212_v10  ;;  %872 = vset.pattern.permute.xlu1 %v916_v13  ;;  %v327_v50 = vld [vmem:[%s1141_s7] sm:$0xff] }
   0xd   :  { %813 = vmatprep.subr.mxu0 %v914_v1  ;;  %873 = vset.pattern.permute.xlu0 %v916_v13  ;;  %v580_v61 = vld [vmem:[%s1142_s8] sm:$0xff]  ;;  %s920_s8 = smov [#allocation2]  }
   0xe   :  { %814 = vmatpush3.msra.mxu0 %v211_v11  ;;  %821 = vmatpush3.msra.mxu1 %v326_v26  ;;  %v752_v3 = vld [vmem:[%s1143_s9] ss:$0 sm:$0xff]  ;;  %s725_s9 = sshll.u32 %s920_s8, 4  ;;  %s726_s9 = int_to_ptr.vmem [resolvable:$true] %s725_s9 }
   0xf   :  { %815 = vmatprep.subr.mxu0 %v914_v1  ;;  %822 = vmatprep.subr.mxu1 %v914_v1  ;;  %s892_s24 = scalar_lea.vmem %s726_s9, 512  ;;  %p897_p1 = scmp.lt.s32.totalorder %s726_s9, %s726_s9 }
  0x10   :  { %816 = vmatpush3.msra.mxu0 %v210_v12  ;;  %823 = vmatpush3.msra.mxu1 %v325_v27  ;;  %p893_p0 = scmp.ne.s32.totalorder %s726_s9, %s892_s24  ;;  %p898_p2 = scmp.lt.s32.totalorder %s892_s24, %s892_s24 }
  0x11   :  { %824 = vmatprep.subr.mxu1 %v914_v1 }
  0x12   :  { %825 = vmatpush3.msra.mxu1 %v324_v28  ;;  %p899_p3 = por %p898_p2, %p897_p1 }
  0x13   :  { %826 = vmatprep.subr.mxu1 %v914_v1 }
  0x14   :  { %827 = vmatpush3.msra.mxu1 %v323_v29  ;;  %p900_p4 = pnand %p899_p3, %p893_p0 }
  0x15   :  { %828 = vmatprep.subr.mxu1 %v914_v1 }
  0x16   :  { %829 = vmatpush3.msra.mxu1 %v322_v30 }
  0x17   :  { %830 = vmatprep.subr.mxu1 %v914_v1 }
  0x18   :  { %831 = vmatpush3.msra.mxu1 %v321_v31 }
  0x19   :  { %832 = vmatprep.subr.mxu1 %v914_v1 }
  0x1a   :  { %833 = vmatpush3.msra.mxu1 %v320_v32 }
  0x1b   :  { %834 = vmatprep.subr.mxu1 %v914_v1 }
  0x1c   :  { %835 = vmatpush3.msra.mxu1 %v319_v33 }
  0x8d   :  { %v197_v14 = vpop.xlane.xlu0 %196 }
  0x8e   :  { %v204_v15 = vrot.slane %v197_v14, 4 }
  0x91   :  { %v116_v16 = vpop.xlane.xlu0 %115 }
  0x92   :  { %v206_v17 = vsel %vm201_vm3, %v116_v16, %v204_v15 }
  0x93   :  { %v207_v18 = vmax.f32 %v206_v17, 1e-08 }
  0x95   :  { %874 = vrcp.f32 %v207_v18 }
  0xa2   :  { %v875_v19 = vpop.eup %874 }
  0xa3   :  { %290 = vperm.xlu1 %872, %v875_v19  }
  0xc6   :  { %v109_v20 = vpop.f32.mrf.mxu1 }
  0xc8   :  { %v801_v21 = vpop.f32.mrf.mxu1 }
  0xca   :  { %v191_v22 = vpop.f32.mrf.mxu1 }
  0xcb   :  { %v199_v23 = vrot.slane %v191_v22, 4 }
  0xcc   :  { %v808_v24 = vpop.f32.mrf.mxu1 }
  0xcd   :  { %v202_v25 = vsel %vm201_vm3, %v109_v20, %v199_v23 }
  0xce   :  { %818 = vmatmul.mubr.msk.f32.vlgmr.msra.gmra.mxu0 %vm214_vm4, %v202_v25 }
  0xcf   :  { %841 = vmatprep.mubr.msk.f32.mxu0 %vm404_vm7, %v402_v49 }
 0x11e   :  { %v291_v34 = vpop.permute.xlu1 %290 }
 0x18e   :  { %v284_v35 = vpop.f32.mrf.mxu0 }
 0x18f   :  { %v293_v37 = vmul.f32 %v291_v34, %v284_v35 }
 0x190   :  { %v819_v38 = vpop.f32.mrf.mxu0 }
 0x191   :  { %v301_v39 = vadd.f32 %v742_v36, %v293_v37 }
 0x193   :  { %v302_v40 = vmax.f32 %v301_v39, 0.0 }
 0x195   :  { %307 = vrot.lane.b32.xlu0 %v302_v40, %s917_s26  ;;  %304 = vrot.lane.b32.xlu1 %v302_v40, %s918_s27 }
 0x199   :  { %310 = vrot.lane.b32.xlu1 %v302_v40, %s919_s28 }
 0x207   :  { %v305_v41 = vpop.permute.xlu1 %304  ;;  %v308_v42 = vpop.permute.xlu0 %307 }
 0x208   :  { %v313_v43 = vsel %vm39_vm2, %v302_v40, %v305_v41 }
 0x209   :  { %v314_v45 = vsel %vm214_vm4, %v313_v43, %v308_v42 }
 0x20b   :  { %v311_v46 = vpop.permute.xlu1 %310 }
 0x20c   :  { %v316_v47 = vsel %vm315_vm5, %v314_v45, %v311_v46 }
 0x20d   :  { %v318_v48 = vmul.f32 %v317_v44, %v316_v47 }
 0x20f   :  { %837 = vmatmul.mubr.msk.f32.vlgmr.msra.gmra.mxu1 %vm328_vm6, %v318_v48 }
 0x2cf   :  { %v398_v51 = vpop.f32.mrf.mxu1 }
 0x2d0   :  { %v399_v52 = vadd.f32 %v398_v51, %v327_v50 }
 0x2d1   :  { %v838_v53 = vpop.f32.mrf.mxu1 }
 0x2d2   :  { %v492_v55 = vrot.slane %v399_v52, 4  ;;  %839 = vmatprep.subr.msk.mxu0 %vm201_vm3, %v399_v52 }
 0x2d3   :  { %840 = vmatpush3.msk.msra.mxu0 %vm201_vm3, %v399_v52 }
 0x2d4   :  { %842 = vmatmul.mubr.msk.f32.vlgmr.msra.gmra.mxu0 %vm404_vm7, %v403_v54  ;;  %844 = vmatprep.subr.msk.mxu0 %vm201_vm3, %v492_v55 }
 0x2d5   :  { %845 = vmatpush3.msk.msra.mxu0 %vm201_vm3, %v492_v55  ;;  %846 = vmatprep.mubr.msk.f32.mxu0 %vm404_vm7, %v747_v56 }
 0x2d6   :  { %849 = vmatprep.subr.mxu0 %v583_v57 }
 0x2d8   :  { %847 = vmatmul.mubr.msk.f32.vlgmr.msra.gmra.mxu0 %vm404_vm7, %v748_v58 }
 0x2d9   :  { %850 = vmatpush3.msra.mxu0 %v583_v57  ;;  %857 = vmatprep.mubr.msk.f32.mxu0 %vm214_vm4, %v987_v2 }
 0x2da   :  { %851 = vmatprep.subr.mxu0 %v582_v59 }
 0x2db   :  { %852 = vmatpush3.msra.mxu0 %v582_v59 }
 0x2dc   :  { %853 = vmatprep.subr.mxu0 %v581_v60 }
 0x2dd   :  { %854 = vmatpush3.msra.mxu0 %v581_v60 }
 0x2de   :  { %855 = vmatprep.subr.mxu0 %v580_v61 }
 0x2df   :  { %856 = vmatpush3.msra.mxu0 %v580_v61 }
 0x2e0   :  { %858 = vmatmul.mubr.msk.f32.vlgmr.msra.gmra.mxu0 %vm214_vm4, %v981_v0 }
 0x2e1   :  { %860 = vmatprep.mubr.msk.f32.mxu0 %vm214_vm4, %v1013_v8 }
 0x2e4   :  { %861 = vmatmul.mubr.msk.f32.gmra.mxu0 %vm214_vm4, %v1003_v6 }
 0x394   :  { %v843_v62 = vpop.f32.mrf.mxu0 }
 0x396   :  { %v480_v63 = vpop.f32.mrf.mxu0 }
 0x398   :  { %v848_v1 = vpop.f32.mrf.mxu0 }
 0x39a   :  { %v567_v2 = vpop.f32.mrf.mxu0 }
 0x3a0   :  { %v859_v4 = vpop.f32.mrf.mxu0 }
 0x3a1   :  { %v675_v5 = vadd.f32 %v859_v4, %v752_v3 }
 0x3a2   :  { %v669_v7 = vpop.f32.mrf.mxu0 }
 0x3a3   :  { %v758_v9 = vmul.f32 -1.442695, %v675_v5  ;;  %v670_v10 = vadd.f32 %v752_v3, %v669_v7 }
 0x3a4   :  { %v862_v0 = vpop.f32.mrf.mxu0 }
 0x3a5   :  { %876 = vpow2.f32 %v758_v9  ;;  %v757_v11 = vmul.f32 -1.442695, %v670_v10  ;;  %v685_v8 = vadd.f32 %v862_v0, %v752_v3 }
 0x3a6   :  { %v679_v12 = vpop.f32.mrf.mxu0 }
 0x3a7   :  { %878 = vpow2.f32 %v757_v11  ;;  %v760_v6 = vmul.f32 -1.442695, %v685_v8  ;;  %v680_v13 = vadd.f32 %v752_v3, %v679_v12 }
 0x3a9   :  { %880 = vpow2.f32 %v760_v6  ;;  %v759_v14 = vmul.f32 -1.442695, %v680_v13 }
 0x3ab   :  { %882 = vpow2.f32 %v759_v14 }
 0x3b2   :  { %v877_v15 = vpop.eup %876 }
 0x3b3   :  { %v701_v16 = vadd.f32 1.0, %v877_v15 }
 0x3b4   :  { %v879_v17 = vpop.eup %878 }
 0x3b5   :  { %884 = vrcp.f32 %v701_v16  ;;  %v700_v18 = vadd.f32 1.0, %v879_v17 }
 0x3b6   :  { %v881_v19 = vpop.eup %880 }
 0x3b7   :  { %886 = vrcp.f32 %v700_v18  ;;  %v703_v20 = vadd.f32 1.0, %v881_v19 }
 0x3b8   :  { %v883_v21 = vpop.eup %882 }
 0x3b9   :  { %888 = vrcp.f32 %v703_v20  ;;  %v702_v22 = vadd.f32 1.0, %v883_v21 }
 0x3bb   :  { %890 = vrcp.f32 %v702_v22 }
 0x3c2   :  { %v885_v23 = vpop.eup %884 }
 0x3c3   :  { %v713_v24 = vmul.f32 %v885_v23, %v843_v62 }
 0x3c4   :  { %v887_v25 = vpop.eup %886 }
 0x3c5   :  { %v712_v26 = vmul.f32 %v887_v25, %v480_v63  ;;  %717 = vst.msk [vmem:[#allocation2 + $0x8] sm:$0xff] %vm214_vm4, %v713_v24 }
 0x3c6   :  { %v889_v27 = vpop.eup %888 }
 0x3c7   :  { %v715_v28 = vmul.f32 %v889_v27, %v848_v1  ;;  %716 = vst.msk [vmem:[#allocation2] sm:$0xff] %vm214_vm4, %v712_v26 }
 0x3c8   :  { %v891_v29 = vpop.eup %890 }
 0x3c9   :  { %v714_v30 = vmul.f32 %v891_v29, %v567_v2  ;;  %719 = vst.msk [vmem:[#allocation2 + $0x18] sm:$0xff] %vm214_vm4, %v715_v28 }
 0x3cb   :  { %718 = vst.msk [vmem:[#allocation2 + $0x10] sm:$0xff] %vm214_vm4, %v714_v30 }
 0x3cc   :  { %903 = shalt.err (!%p900_p4)
}
 0x3cd   :  { %s921_s0 = smov 128   ;;  %s922_s25 = smov 8  }
 0x3ce   :  { %731 = dma.vmem_to_hbm [thread:$0]  %s726_s9, 512, %s1144_s10, [#allocation3], %s921_s0, %s921_s0, %s922_s25  }
 0x3cf   :  { %912 = dma.done.wait [#allocation3], 512  }
 0x3d0   :  { %913 = vsyncadd [#allocation3], 4294966784 }
 0x3d1   :  { %735 = vsyncpa [#allocation3], 1 }

</bundles_post_ra>
